<compile_context>
chip_gen: v7x
topology: tpu7x:2x2x1
jax: 0.10.0
libtpu: 0.0.40
codegen_flags: <defaults>
</compile_context>

<pallas_src>
import functools

import jax
import jax.numpy as jnp
from jax.experimental import pallas as pl
from jax.experimental.pallas import tpu as pltpu


# ---------------------------------------------------------------------------
# Fused kernel: normalize + 3 gram blocks (bf16 MXU) + masked CE + logit stats
# ---------------------------------------------------------------------------
def _fused_itc_kernel(scale_ref, idxc_ref, idxr_ref, img_ref, txt_ref,
                      scal_ref, sims_ref, *, weight_i2t):
    B = img_ref.shape[0]
    s = scale_ref[0]                      # clamped logit_scale (SMEM scalar)
    sqrt_inv = jax.lax.rsqrt(s)           # sqrt(1 / logit_scale)

    # --- L2 row-normalization (F.normalize p=2 dim=-1), done ONCE per tower,
    # with sqrt(1/scale) folded into the per-row rsqrt: the "sims/logit_scale"
    # of both CE terms then costs zero extra BxB passes.
    xi = img_ref[...].astype(jnp.float32)
    xt = txt_ref[...].astype(jnp.float32)
    ri = jax.lax.rsqrt(jnp.sum(xi * xi, axis=-1, keepdims=True) + 1e-24) * sqrt_inv
    rt = jax.lax.rsqrt(jnp.sum(xt * xt, axis=-1, keepdims=True) + 1e-24) * sqrt_inv
    ni = xi * ri                                               # (B, D) scaled
    nt = xt * rt

    # Positive (diagonal) logit shared by both CE terms (== diag(sims)/scale),
    # kept in f32 (more accurate + cheaper than extracting the gram diagonal).
    pos = jnp.sum(ni * nt, axis=-1, keepdims=True)             # (B, 1)
    mean_pos = jnp.mean(pos)

    # --- 3 unique gram blocks on the MXU, bf16 operands / f32 accumulation.
    # sims_t2i == sims_i2t.T, so its CE uses column reductions of s_i2t
    # instead of a 4th matmul or an XLU transpose.
    nib = ni.astype(jnp.bfloat16)
    ntb = nt.astype(jnp.bfloat16)
    dims = (((1,), (1,)), ((), ()))       # contract feature dim of both (NT)
    s_i2t = jax.lax.dot_general(nib, ntb, dims, preferred_element_type=jnp.float32)
    s_t2t = jax.lax.dot_general(ntb, ntb, dims, preferred_element_type=jnp.float32)
    s_i2i = jax.lax.dot_general(nib, nib, dims, preferred_element_type=jnp.float32)

    # Raw cosine sims (torch's sims_i2t) for the output tensor.
    sims_ref[...] = s_i2t * s

    # --- duplicate-id positive mask. torch subtracts sim_targets*1e9; the
    # exp underflows to exactly 0 either way, so a plain where(-1e9) is
    # numerically identical and skips the row-sum / reciprocal / multiply.
    pos_eq = idxc_ref[...] == idxr_ref[...]                    # (B, B) bool
    neg_big = jnp.float32(-1.0e9)
    b_t2t = jnp.where(pos_eq, neg_big, s_t2t)
    b_i2i = jnp.where(pos_eq, neg_big, s_i2i)

    # --- CE(i2t): logits = [s_i2t | b_t2t], row-wise stable LSE.
    rowmax_i2t = jnp.max(s_i2t, axis=-1, keepdims=True)        # reused in stats
    m1 = jnp.maximum(rowmax_i2t, jnp.max(b_t2t, axis=-1, keepdims=True))
    se1 = (jnp.sum(jnp.exp(s_i2t - m1), axis=-1, keepdims=True)
           + jnp.sum(jnp.exp(b_t2t - m1), axis=-1, keepdims=True))
    loss_i2t = jnp.mean(m1 + jnp.log(se1)) - mean_pos

    # --- CE(t2i): logits = [s_i2t.T | b_i2i]. Rows of s_i2t.T are columns of
    # s_i2t and b_i2i is symmetric, so everything is axis-0 reductions.
    m2 = jnp.maximum(jnp.max(s_i2t, axis=0, keepdims=True),
                     jnp.max(b_i2i, axis=0, keepdims=True))
    se2 = (jnp.sum(jnp.exp(s_i2t - m2), axis=0, keepdims=True)
           + jnp.sum(jnp.exp(b_i2i - m2), axis=0, keepdims=True))
    loss_t2i = jnp.mean(m2 + jnp.log(se2)) - mean_pos

    loss = weight_i2t * loss_i2t + (1.0 - weight_i2t) * loss_t2i

    # --- logit stats. min/mean/max/argmax are invariant to the positive
    # scale factor, so reduce the scaled gram and rescale scalars afterwards.
    colf = jax.lax.broadcasted_iota(jnp.int32, (B, B), 1).astype(jnp.float32)
    first_amax = jnp.min(jnp.where(s_i2t == rowmax_i2t, colf, float(B)),
                         axis=-1, keepdims=True)               # (B, 1)
    row_ids = jax.lax.broadcasted_iota(jnp.int32, (B, 1), 0).astype(jnp.float32)
    acc = jnp.mean((first_amax == row_ids).astype(jnp.float32))

    scal_ref[0, 0] = loss
    scal_ref[0, 1] = jnp.min(s_i2t) * s
    scal_ref[0, 2] = jnp.mean(s_i2t) * s
    scal_ref[0, 3] = jnp.max(rowmax_i2t) * s
    scal_ref[0, 4] = acc
    scal_ref[0, 5] = jnp.float32(0.0)
    scal_ref[0, 6] = jnp.float32(0.0)
    scal_ref[0, 7] = jnp.float32(0.0)


@functools.partial(jax.jit, static_argnames=("weight_i2t",))
def fused_itc(logit_scale, image_embeds, text_embeds, image_idx, *, weight_i2t):
    B, D = image_embeds.shape
    # with torch.no_grad(): self.logit_scale.clamp_(0.001, 0.5)
    scale = jnp.clip(logit_scale.astype(jnp.float32), 0.001, 0.5).reshape(1)
    idx_c = image_idx.astype(jnp.int32).reshape(B, 1)
    idx_r = image_idx.astype(jnp.int32).reshape(1, B)
    kernel = functools.partial(_fused_itc_kernel, weight_i2t=float(weight_i2t))

    # Scoped-VMEM limit sized from the real working set (default is only
    # 16/32 MiB on v5e/v6e/v7x).  Floor 32 MiB is safe on every chip.
    working = 12 * B * D + 40 * B * B
    vmem_limit = int(min(max(working + (8 << 20), 32 << 20), 100 << 20))

    scal, sims_i2t = pl.pallas_call(
        kernel,
        out_shape=(jax.ShapeDtypeStruct((1, 8), jnp.float32),   # loss + stats
                   jax.ShapeDtypeStruct((B, B), jnp.float32)),  # sims_i2t
        in_specs=[pl.BlockSpec(memory_space=pltpu.SMEM),        # logit_scale
                  pl.BlockSpec(memory_space=pltpu.VMEM),        # image_idx col
                  pl.BlockSpec(memory_space=pltpu.VMEM),        # image_idx row
                  pl.BlockSpec(memory_space=pltpu.VMEM),        # image embeds
                  pl.BlockSpec(memory_space=pltpu.VMEM)],       # text embeds
        out_specs=(pl.BlockSpec(memory_space=pltpu.SMEM),
                   pl.BlockSpec(memory_space=pltpu.VMEM)),
        compiler_params=pltpu.CompilerParams(vmem_limit_bytes=vmem_limit),
    )(scale, idx_c, idx_r, image_embeds, text_embeds)
    return scal, sims_i2t


# ---------------------------------------------------------------------------
# Standalone dist_func kernel (EUCLID branch), kept for API parity.
# ---------------------------------------------------------------------------
def _cosine_sims_kernel(x_ref, y_ref, o_ref):
    x = x_ref[...].astype(jnp.float32)
    y = y_ref[...].astype(jnp.float32)
    xn = (x * jax.lax.rsqrt(jnp.sum(x * x, axis=-1, keepdims=True) + 1e-24)
          ).astype(jnp.bfloat16)
    yn = (y * jax.lax.rsqrt(jnp.sum(y * y, axis=-1, keepdims=True) + 1e-24)
          ).astype(jnp.bfloat16)
    o_ref[...] = jax.lax.dot_general(xn, yn, (((1,), (1,)), ((), ())),
                                     preferred_element_type=jnp.float32)


def cosine_sims(x, y):
    Bx, _ = x.shape
    By = y.shape[0]
    return pl.pallas_call(
        _cosine_sims_kernel,
        out_shape=jax.ShapeDtypeStruct((Bx, By), jnp.float32),
        in_specs=[pl.BlockSpec(memory_space=pltpu.VMEM),
                  pl.BlockSpec(memory_space=pltpu.VMEM)],
        out_specs=pl.BlockSpec(memory_space=pltpu.VMEM),
        compiler_params=pltpu.CompilerParams(vmem_limit_bytes=(64 << 20)),
    )(x, y)


# ---------------------------------------------------------------------------
# BaseModel equivalent (manifold = 'euclidean', model_ckt without 'blip')
# ---------------------------------------------------------------------------
class BaseModelPallas:
    def __init__(self, temp=0.07, weight_i2t=0.5):
        # nn.Parameter(torch.tensor(config.temp)); curv = 0 (EUCLID), clip_r None.
        self.logit_scale = jnp.asarray(temp, dtype=jnp.float32)
        self.weight_i2t = float(weight_i2t)

    def dist_func(self, x, y):
        return cosine_sims(x, y)

    def itc_loss(self, image_idx, image_embeds, text_embeds):
        scal, sims_i2t = fused_itc(self.logit_scale, image_embeds, text_embeds,
                                   image_idx, weight_i2t=self.weight_i2t)
        host = jax.device_get(scal)          # ONE device->host sync for all stats
        stats = {
            'logits/itc_loss': float(host[0, 0]),
            'logits/min': float(host[0, 1]),
            'logits/mean': float(host[0, 2]),
            'logits/max': float(host[0, 3]),
            'logits/acc': float(host[0, 4]),
        }
        return scal[0, 0], stats, sims_i2t

    def forward(self, image_embeds, text_embeds, image_id):
        loss, stats, _ = self.itc_loss(image_id, image_embeds, text_embeds)
        return loss, stats


if __name__ == "__main__":
    key = jax.random.PRNGKey(0)
    k_img, k_txt = jax.random.split(key)

    B, D = 8, 512   # dim = 512 since 'blip' not in model_ckt
    image_embeds = jax.random.normal(k_img, (B, D), dtype=jnp.float32)
    text_embeds = jax.random.normal(k_txt, (B, D), dtype=jnp.float32)
    image_id = jnp.arange(B, dtype=jnp.int32)

    model = BaseModelPallas(temp=0.07, weight_i2t=0.5)
    loss, stats = model.forward(image_embeds, text_embeds, image_id)
    jax.block_until_ready(loss)
    print("KERNEL_OK")
</pallas_src>

<mosaic_0001>
module attributes {stable_mosaic.version = 11 : i64} {
  func.func @_fused_itc_kernel(%arg0: memref<1xf32, #tpu.memory_space<smem>>, %arg1: memref<8x1xi32, #tpu.memory_space<vmem>>, %arg2: memref<1x8xi32, #tpu.memory_space<vmem>>, %arg3: memref<8x512xf32, #tpu.memory_space<vmem>>, %arg4: memref<8x512xf32, #tpu.memory_space<vmem>>, %arg5: memref<1x8xf32, #tpu.memory_space<smem>>, %arg6: memref<8x8xf32, #tpu.memory_space<vmem>>) attributes {dimension_semantics = [], scalar_prefetch = 0 : i64, scratch_operands = 0 : i64, tpu.core_type = #tpu.core_type<tc>} {
    %c0 = arith.constant 0 : index
    %0 = memref.load %arg0[%c0] : memref<1xf32, #tpu.memory_space<smem>>
    %1 = math.rsqrt %0 : f32
    %c0_0 = arith.constant 0 : index
    %c0_1 = arith.constant 0 : index
    %2 = vector.load %arg3[%c0_0, %c0_1] : memref<8x512xf32, #tpu.memory_space<vmem>>, vector<8x512xf32>
    %c0_2 = arith.constant 0 : index
    %c0_3 = arith.constant 0 : index
    %3 = vector.load %arg4[%c0_2, %c0_3] : memref<8x512xf32, #tpu.memory_space<vmem>>, vector<8x512xf32>
    %4 = arith.mulf %2, %2 : vector<8x512xf32>
    %cst = arith.constant dense<0.000000e+00> : vector<8xf32>
    %5 = vector.multi_reduction <add>, %4, %cst [1] : vector<8x512xf32> to vector<8xf32>
    %6 = vector.shape_cast %5 : vector<8xf32> to vector<8x1xf32>
    %cst_4 = arith.constant 1.000000e-24 : f32
    %7 = vector.broadcast %cst_4 : f32 to vector<8x1xf32>
    %8 = arith.addf %6, %7 : vector<8x1xf32>
    %9 = math.rsqrt %8 : vector<8x1xf32>
    %10 = vector.broadcast %1 : f32 to vector<8x1xf32>
    %11 = arith.mulf %9, %10 : vector<8x1xf32>
    %12 = arith.mulf %3, %3 : vector<8x512xf32>
    %cst_5 = arith.constant dense<0.000000e+00> : vector<8xf32>
    %13 = vector.multi_reduction <add>, %12, %cst_5 [1] : vector<8x512xf32> to vector<8xf32>
    %14 = vector.shape_cast %13 : vector<8xf32> to vector<8x1xf32>
    %cst_6 = arith.constant 1.000000e-24 : f32
    %15 = vector.broadcast %cst_6 : f32 to vector<8x1xf32>
    %16 = arith.addf %14, %15 : vector<8x1xf32>
    %17 = math.rsqrt %16 : vector<8x1xf32>
    %18 = vector.broadcast %1 : f32 to vector<8x1xf32>
    %19 = arith.mulf %17, %18 : vector<8x1xf32>
    %20 = vector.broadcast %11 : vector<8x1xf32> to vector<8x512xf32>
    %21 = arith.mulf %2, %20 : vector<8x512xf32>
    %22 = vector.broadcast %19 : vector<8x1xf32> to vector<8x512xf32>
    %23 = arith.mulf %3, %22 : vector<8x512xf32>
    %24 = arith.mulf %21, %23 : vector<8x512xf32>
    %cst_7 = arith.constant dense<0.000000e+00> : vector<8xf32>
    %25 = vector.multi_reduction <add>, %24, %cst_7 [1] : vector<8x512xf32> to vector<8xf32>
    %26 = vector.shape_cast %25 : vector<8xf32> to vector<8x1xf32>
    %27 = vector.shape_cast %26 : vector<8x1xf32> to vector<1x8x1xf32>
    %cst_8 = arith.constant dense<0.000000e+00> : vector<1xf32>
    %28 = vector.multi_reduction <add>, %27, %cst_8 [1, 2] : vector<1x8x1xf32> to vector<1xf32>
    %29 = vector.shape_cast %28 : vector<1xf32> to vector<1x1x1xf32>
    %30 = vector.extract %29[0, 0, 0] : f32 from vector<1x1x1xf32>
    %cst_9 = arith.constant 8.000000e+00 : f32
    %31 = arith.divf %30, %cst_9 : f32
    %32 = arith.truncf %21 : vector<8x512xf32> to vector<8x512xbf16>
    %33 = arith.truncf %23 : vector<8x512xf32> to vector<8x512xbf16>
    %cst_10 = arith.constant dense<0.000000e+00> : vector<8x8xf32>
    %34 = tpu.matmul %32, %33, %cst_10 {dimension_numbers = #tpu.dot_dimension_numbers<[1], [1], [0], [0], [0, 0, 1, 0], [], []>} : vector<8x512xbf16>, vector<8x512xbf16>, vector<8x8xf32> -> vector<8x8xf32>
    %cst_11 = arith.constant dense<0.000000e+00> : vector<8x8xf32>
    %35 = tpu.matmul %33, %33, %cst_11 {dimension_numbers = #tpu.dot_dimension_numbers<[1], [1], [0], [0], [0, 0, 1, 0], [], []>} : vector<8x512xbf16>, vector<8x512xbf16>, vector<8x8xf32> -> vector<8x8xf32>
    %cst_12 = arith.constant dense<0.000000e+00> : vector<8x8xf32>
    %36 = tpu.matmul %32, %32, %cst_12 {dimension_numbers = #tpu.dot_dimension_numbers<[1], [1], [0], [0], [0, 0, 1, 0], [], []>} : vector<8x512xbf16>, vector<8x512xbf16>, vector<8x8xf32> -> vector<8x8xf32>
    %37 = vector.broadcast %0 : f32 to vector<8x8xf32>
    %38 = arith.mulf %34, %37 : vector<8x8xf32>
    %c0_13 = arith.constant 0 : index
    %c0_14 = arith.constant 0 : index
    %39 = vector.load %arg6[%c0_13, %c0_14] : memref<8x8xf32, #tpu.memory_space<vmem>>, vector<8x8xf32>
    tpu.vector_store %arg6[%c0_13, %c0_14], %38 {strides = array<i32>} : memref<8x8xf32, #tpu.memory_space<vmem>>, vector<8x8xf32>,
    %c0_15 = arith.constant 0 : index
    %c0_16 = arith.constant 0 : index
    %40 = vector.load %arg1[%c0_15, %c0_16] : memref<8x1xi32, #tpu.memory_space<vmem>>, vector<8x1xi32>
    %c0_17 = arith.constant 0 : index
    %c0_18 = arith.constant 0 : index
    %41 = vector.load %arg2[%c0_17, %c0_18] : memref<1x8xi32, #tpu.memory_space<vmem>>, vector<1x8xi32>
    %42 = vector.broadcast %40 : vector<8x1xi32> to vector<8x8xi32>
    %43 = vector.broadcast %41 : vector<1x8xi32> to vector<8x8xi32>
    %44 = arith.cmpi eq, %42, %43 : vector<8x8xi32>
    %cst_19 = arith.constant -1.000000e+09 : f32
    %45 = vector.broadcast %cst_19 : f32 to vector<8x8xf32>
    %46 = arith.select %44, %45, %35 : vector<8x8xi1>, vector<8x8xf32>
    %cst_20 = arith.constant -1.000000e+09 : f32
    %47 = vector.broadcast %cst_20 : f32 to vector<8x8xf32>
    %48 = arith.select %44, %47, %36 : vector<8x8xi1>, vector<8x8xf32>
    %cst_21 = arith.constant dense<0xFF800000> : vector<8xf32>
    %49 = vector.multi_reduction <maximumf>, %34, %cst_21 [1] : vector<8x8xf32> to vector<8xf32>
    %50 = vector.shape_cast %49 : vector<8xf32> to vector<8x1xf32>
    %cst_22 = arith.constant dense<0xFF800000> : vector<8xf32>
    %51 = vector.multi_reduction <maximumf>, %46, %cst_22 [1] : vector<8x8xf32> to vector<8xf32>
    %52 = vector.shape_cast %51 : vector<8xf32> to vector<8x1xf32>
    %53 = arith.maximumf %50, %52 : vector<8x1xf32>
    %54 = vector.broadcast %53 : vector<8x1xf32> to vector<8x8xf32>
    %55 = arith.subf %34, %54 : vector<8x8xf32>
    %56 = math.exp %55 : vector<8x8xf32>
    %cst_23 = arith.constant dense<0.000000e+00> : vector<8xf32>
    %57 = vector.multi_reduction <add>, %56, %cst_23 [1] : vector<8x8xf32> to vector<8xf32>
    %58 = vector.shape_cast %57 : vector<8xf32> to vector<8x1xf32>
    %59 = vector.broadcast %53 : vector<8x1xf32> to vector<8x8xf32>
    %60 = arith.subf %46, %59 : vector<8x8xf32>
    %61 = math.exp %60 : vector<8x8xf32>
    %cst_24 = arith.constant dense<0.000000e+00> : vector<8xf32>
    %62 = vector.multi_reduction <add>, %61, %cst_24 [1] : vector<8x8xf32> to vector<8xf32>
    %63 = vector.shape_cast %62 : vector<8xf32> to vector<8x1xf32>
    %64 = arith.addf %58, %63 : vector<8x1xf32>
    %65 = math.log %64 : vector<8x1xf32>
    %66 = arith.addf %53, %65 : vector<8x1xf32>
    %67 = vector.shape_cast %66 : vector<8x1xf32> to vector<1x8x1xf32>
    %cst_25 = arith.constant dense<0.000000e+00> : vector<1xf32>
    %68 = vector.multi_reduction <add>, %67, %cst_25 [1, 2] : vector<1x8x1xf32> to vector<1xf32>
    %69 = vector.shape_cast %68 : vector<1xf32> to vector<1x1x1xf32>
    %70 = vector.extract %69[0, 0, 0] : f32 from vector<1x1x1xf32>
    %cst_26 = arith.constant 8.000000e+00 : f32
    %71 = arith.divf %70, %cst_26 : f32
    %72 = arith.subf %71, %31 : f32
    %cst_27 = arith.constant dense<0xFF800000> : vector<8xf32>
    %73 = vector.multi_reduction <maximumf>, %34, %cst_27 [0] : vector<8x8xf32> to vector<8xf32>
    %74 = vector.shape_cast %73 : vector<8xf32> to vector<1x8xf32>
    %cst_28 = arith.constant dense<0xFF800000> : vector<8xf32>
    %75 = vector.multi_reduction <maximumf>, %48, %cst_28 [0] : vector<8x8xf32> to vector<8xf32>
    %76 = vector.shape_cast %75 : vector<8xf32> to vector<1x8xf32>
    %77 = arith.maximumf %74, %76 : vector<1x8xf32>
    %78 = vector.broadcast %77 : vector<1x8xf32> to vector<8x8xf32>
    %79 = arith.subf %34, %78 : vector<8x8xf32>
    %80 = math.exp %79 : vector<8x8xf32>
    %cst_29 = arith.constant dense<0.000000e+00> : vector<8xf32>
    %81 = vector.multi_reduction <add>, %80, %cst_29 [0] : vector<8x8xf32> to vector<8xf32>
    %82 = vector.shape_cast %81 : vector<8xf32> to vector<1x8xf32>
    %83 = vector.broadcast %77 : vector<1x8xf32> to vector<8x8xf32>
    %84 = arith.subf %48, %83 : vector<8x8xf32>
    %85 = math.exp %84 : vector<8x8xf32>
    %cst_30 = arith.constant dense<0.000000e+00> : vector<8xf32>
    %86 = vector.multi_reduction <add>, %85, %cst_30 [0] : vector<8x8xf32> to vector<8xf32>
    %87 = vector.shape_cast %86 : vector<8xf32> to vector<1x8xf32>
    %88 = arith.addf %82, %87 : vector<1x8xf32>
    %89 = math.log %88 : vector<1x8xf32>
    %90 = arith.addf %77, %89 : vector<1x8xf32>
    %91 = vector.shape_cast %90 : vector<1x8xf32> to vector<1x1x8xf32>
    %cst_31 = arith.constant dense<0.000000e+00> : vector<1xf32>
    %92 = vector.multi_reduction <add>, %91, %cst_31 [1, 2] : vector<1x1x8xf32> to vector<1xf32>
    %93 = vector.shape_cast %92 : vector<1xf32> to vector<1x1x1xf32>
    %94 = vector.extract %93[0, 0, 0] : f32 from vector<1x1x1xf32>
    %cst_32 = arith.constant 8.000000e+00 : f32
    %95 = arith.divf %94, %cst_32 : f32
    %96 = arith.subf %95, %31 : f32
    %cst_33 = arith.constant 5.000000e-01 : f32
    %97 = arith.mulf %cst_33, %72 : f32
    %cst_34 = arith.constant 5.000000e-01 : f32
    %98 = arith.mulf %cst_34, %96 : f32
    %99 = arith.addf %97, %98 : f32
    %100 = tpu.iota {dimensions = array<i32: 1>} : vector<8x8xi32>
    %101 = arith.sitofp %100 : vector<8x8xi32> to vector<8x8xf32>
    %102 = vector.broadcast %50 : vector<8x1xf32> to vector<8x8xf32>
    %103 = arith.cmpf oeq, %34, %102 : vector<8x8xf32>
    %cst_35 = arith.constant 8.000000e+00 : f32
    %104 = vector.broadcast %cst_35 : f32 to vector<8x8xf32>
    %105 = arith.select %103, %101, %104 : vector<8x8xi1>, vector<8x8xf32>
    %cst_36 = arith.constant dense<0x7F800000> : vector<8xf32>
    %106 = vector.multi_reduction <minimumf>, %105, %cst_36 [1] : vector<8x8xf32> to vector<8xf32>
    %107 = vector.shape_cast %106 : vector<8xf32> to vector<8x1xf32>
    %108 = tpu.iota {dimensions = array<i32: 0>} : vector<8x1xi32>
    %109 = arith.sitofp %108 : vector<8x1xi32> to vector<8x1xf32>
    %110 = arith.cmpf oeq, %107, %109 : vector<8x1xf32>
    %111 = arith.extui %110 : vector<8x1xi1> to vector<8x1xi32>
    %112 = arith.sitofp %111 : vector<8x1xi32> to vector<8x1xf32>
    %113 = vector.shape_cast %112 : vector<8x1xf32> to vector<1x8x1xf32>
    %cst_37 = arith.constant dense<0.000000e+00> : vector<1xf32>
    %114 = vector.multi_reduction <add>, %113, %cst_37 [1, 2] : vector<1x8x1xf32> to vector<1xf32>
    %115 = vector.shape_cast %114 : vector<1xf32> to vector<1x1x1xf32>
    %116 = vector.extract %115[0, 0, 0] : f32 from vector<1x1x1xf32>
    %cst_38 = arith.constant 8.000000e+00 : f32
    %117 = arith.divf %116, %cst_38 : f32
    %c0_39 = arith.constant 0 : index
    %c0_40 = arith.constant 0 : index
    %118 = memref.load %arg5[%c0_39, %c0_40] : memref<1x8xf32, #tpu.memory_space<smem>>
    memref.store %99, %arg5[%c0_39, %c0_40] : memref<1x8xf32, #tpu.memory_space<smem>>
    %119 = vector.shape_cast %34 : vector<8x8xf32> to vector<1x8x8xf32>
    %cst_41 = arith.constant dense<0x7F800000> : vector<1xf32>
    %120 = vector.multi_reduction <minimumf>, %119, %cst_41 [1, 2] : vector<1x8x8xf32> to vector<1xf32>
    %121 = vector.shape_cast %120 : vector<1xf32> to vector<1x1x1xf32>
    %122 = vector.extract %121[0, 0, 0] : f32 from vector<1x1x1xf32>
    %123 = arith.mulf %122, %0 : f32
    %c0_42 = arith.constant 0 : index
    %c1 = arith.constant 1 : index
    %124 = memref.load %arg5[%c0_42, %c1] : memref<1x8xf32, #tpu.memory_space<smem>>
    memref.store %123, %arg5[%c0_42, %c1] : memref<1x8xf32, #tpu.memory_space<smem>>
    %125 = vector.shape_cast %34 : vector<8x8xf32> to vector<1x8x8xf32>
    %cst_43 = arith.constant dense<0.000000e+00> : vector<1xf32>
    %126 = vector.multi_reduction <add>, %125, %cst_43 [1, 2] : vector<1x8x8xf32> to vector<1xf32>
    %127 = vector.shape_cast %126 : vector<1xf32> to vector<1x1x1xf32>
    %128 = vector.extract %127[0, 0, 0] : f32 from vector<1x1x1xf32>
    %cst_44 = arith.constant 6.400000e+01 : f32
    %129 = arith.divf %128, %cst_44 : f32
    %130 = arith.mulf %129, %0 : f32
    %c0_45 = arith.constant 0 : index
    %c2 = arith.constant 2 : index
    %131 = memref.load %arg5[%c0_45, %c2] : memref<1x8xf32, #tpu.memory_space<smem>>
    memref.store %130, %arg5[%c0_45, %c2] : memref<1x8xf32, #tpu.memory_space<smem>>
    %132 = vector.shape_cast %50 : vector<8x1xf32> to vector<1x8x1xf32>
    %cst_46 = arith.constant dense<0xFF800000> : vector<1xf32>
    %133 = vector.multi_reduction <maximumf>, %132, %cst_46 [1, 2] : vector<1x8x1xf32> to vector<1xf32>
    %134 = vector.shape_cast %133 : vector<1xf32> to vector<1x1x1xf32>
    %135 = vector.extract %134[0, 0, 0] : f32 from vector<1x1x1xf32>
    %136 = arith.mulf %135, %0 : f32
    %c0_47 = arith.constant 0 : index
    %c3 = arith.constant 3 : index
    %137 = memref.load %arg5[%c0_47, %c3] : memref<1x8xf32, #tpu.memory_space<smem>>
    memref.store %136, %arg5[%c0_47, %c3] : memref<1x8xf32, #tpu.memory_space<smem>>
    %c0_48 = arith.constant 0 : index
    %c4 = arith.constant 4 : index
    %138 = memref.load %arg5[%c0_48, %c4] : memref<1x8xf32, #tpu.memory_space<smem>>
    memref.store %117, %arg5[%c0_48, %c4] : memref<1x8xf32, #tpu.memory_space<smem>>
    %cst_49 = arith.constant 0.000000e+00 : f32
    %c0_50 = arith.constant 0 : index
    %c5 = arith.constant 5 : index
    %139 = memref.load %arg5[%c0_50, %c5] : memref<1x8xf32, #tpu.memory_space<smem>>
    memref.store %cst_49, %arg5[%c0_50, %c5] : memref<1x8xf32, #tpu.memory_space<smem>>
    %cst_51 = arith.constant 0.000000e+00 : f32
    %c0_52 = arith.constant 0 : index
    %c6 = arith.constant 6 : index
    %140 = memref.load %arg5[%c0_52, %c6] : memref<1x8xf32, #tpu.memory_space<smem>>
    memref.store %cst_51, %arg5[%c0_52, %c6] : memref<1x8xf32, #tpu.memory_space<smem>>
    %cst_53 = arith.constant 0.000000e+00 : f32
    %c0_54 = arith.constant 0 : index
    %c7 = arith.constant 7 : index
    %141 = memref.load %arg5[%c0_54, %c7] : memref<1x8xf32, #tpu.memory_space<smem>>
    memref.store %cst_53, %arg5[%c0_54, %c7] : memref<1x8xf32, #tpu.memory_space<smem>>
    return
  }
}

</mosaic_0001>

<bundles_post_ra>
// kernel: fused_itc.1
= control target key start
LH: loop header
LB: loop body
LE: loop exit
PB: predicated region body
PF: predicated region fallthrough
CT: control target
= control target key end

     0   :  { %13 = vsyncpa [#allocation4], 0  ;;  %s827_s0 = inlined_call_operand.<no memory space> [shape: f32[1], index: 0, kind: input, shape index: {}]   ;;  %s828_s1 = inlined_call_operand.vmem [shape: s32[8,1], index: 1, kind: input, shape index: {}]   ;;  %s829_s2 = inlined_call_operand.vmem [shape: s32[1,8], index: 2, kind: input, shape index: {}]   ;;  %s830_s3 = inlined_call_operand.hbm [shape: f32[8,512], index: 3, kind: input, shape index: {}]   ;;  %s831_s4 = inlined_call_operand.vmem [shape: f32[8,512], index: 4, kind: input, shape index: {}]   ;;  %s832_s5 = inlined_call_operand.hbm [shape: f32[1,8], index: 5, kind: output, shape index: {0}]   ;;  %s833_s6 = inlined_call_operand.hbm [shape: f32[8,8], index: 6, kind: output, shape index: {1}]  }
   0x1   :  { %14 = vsyncpa [#allocation6], 0 }
   0x2   :  { %15 = vsyncpa [#allocation5], 0  ;;  %s680_s21 = smov [#allocation3]   ;;  %s620_s25 = scalar_lea.hbm %s830_s3, 512 }
   0x3   :  { %s28_s22 = sshll.u32 %s680_s21, 4  ;;  %p621_p0 = scmp.ne.s32.totalorder %s830_s3, %s620_s25  ;;  %s29_s22 = int_to_ptr.vmem [resolvable:$true] %s28_s22 }
   0x4   :  { %p624_p1 = scmp.lt.u32.totalorder %s620_s25, %s830_s3 }
   0x6   :  { %p626_p2 = pnand %p624_p1, %p621_p0 }
   0x8   :  { %629 = shalt.err (!%p626_p2)
}
   0x9   :  { %s630_s30 = scalar_lea.vmem %s29_s22, 512  ;;  %p635_p4 = scmp.lt.s32.totalorder %s29_s22, %s29_s22 }
   0xa   :  { %p631_p3 = scmp.ne.s32.totalorder %s29_s22, %s630_s30  ;;  %p636_p5 = scmp.lt.s32.totalorder %s630_s30, %s630_s30 }
   0xc   :  { %p637_p6 = por %p636_p5, %p635_p4 }
   0xe   :  { %p638_p7 = pnand %p637_p6, %p631_p3 }
  0x10   :  { %641 = shalt.err (!%p638_p7)
}
  0x11   :  { %31 = dma.hbm_to_vmem [thread:$0]  %s830_s3, 512, %s29_s22, [#allocation4]  }
  0x12   :  { %674 = dma.done.wait [#allocation4], 512  }
  0x13   :  { %675 = vsyncadd [#allocation4], 4294966784  ;;  %v39_v0 = vstv %s827_s0  ;;  %v46_v1 = vld [vmem:[%s831_s4] sm:$0xff]  ;;  %v47_v2 = vld [vmem:[%s831_s4 + $0x8] sm:$0xff]  ;;  %v681_v25 = vmov 0   ;;  %vm356_vm0 = vcmask 64512  }
  0x14   :  { %602 = vrsqrt.f32 %v39_v0  ;;  %v48_v3 = vld [vmem:[%s831_s4 + $0x10] sm:$0xff]  ;;  %v49_v4 = vld [vmem:[%s831_s4 + $0x18] sm:$0xff]  ;;  %v63_v5 = vmul.f32 %v46_v1, %v46_v1  ;;  %v64_v6 = vmul.f32 %v47_v2, %v47_v2  ;;  %v42_v8 = vld [vmem:[#allocation3] sm:$0xff]  ;;  %600 = vset.pattern.permute.xlu1 %v681_v25  ;;  %601 = vset.pattern.permute.xlu0 %v681_v25  ;;  %vm92_vm3 = vcmask 7168   ;;  %s684_s25 = smov [#allocation8]  }
  0x15   :  { %v65_v7 = vmul.f32 %v48_v3, %v48_v3  ;;  %v43_v9 = vld [vmem:[#allocation3 + $0x8] sm:$0xff]  ;;  %v44_v10 = vld [vmem:[#allocation3 + $0x10] sm:$0xff]  ;;  %v45_v11 = vld [vmem:[#allocation3 + $0x18] sm:$0xff]  ;;  %v50_v12 = vmul.f32 %v42_v8, %v42_v8  ;;  %v66_v14 = vmul.f32 %v49_v4, %v49_v4  ;;  %vm445_vm4 = vcmask 57344   ;;  %s553_s26 = sshll.u32 %s684_s25, 4  ;;  %s554_s26 = int_to_ptr.vmem [resolvable:$true] %s553_s26 }
  0x16   :  { %v51_v13 = vmul.f32 %v43_v9, %v43_v9  ;;  %v67_v15 = vadd.f32 %v64_v6, %v63_v5  ;;  %v52_v16 = vmul.f32 %v44_v10, %v44_v10  ;;  %v53_v20 = vmul.f32 %v45_v11, %v45_v11  ;;  %v358_v24 = vld [vmem:[%s828_s1] sm:$0xff]  ;;  %s642_s27 = scalar_lea.vmem %s554_s26, 128  ;;  %p647_p9 = scmp.lt.s32.totalorder %s554_s26, %s554_s26 }
  0x17   :  { %361 = vperm.xlu1 %600, %v358_v24   ;;  %p643_p8 = scmp.ne.s32.totalorder %s554_s26, %s642_s27  ;;  %p648_p10 = scmp.lt.s32.totalorder %s642_s27, %s642_s27 }
  0x18   :  { %v54_v18 = vadd.f32 %v51_v13, %v50_v12  ;;  %v68_v19 = vadd.f32 %v67_v15, %v65_v7 }
  0x19   :  { %p649_p11 = por %p648_p10, %p647_p9 }
  0x1a   :  { %v55_v21 = vadd.f32 %v54_v18, %v52_v16  ;;  %v69_v22 = vadd.f32 %v68_v19, %v66_v14 }
  0x1b   :  { %p650_p12 = pnand %p649_p11, %p643_p8 }
  0x1c   :  { %70 = vadd.xlane.f32.xlu0 %v69_v22  ;;  %v56_v23 = vadd.f32 %v55_v21, %v53_v20 }
  0x1e   :  { %v603_v17 = vpop.eup %602 }
  0x1f   :  { %578 = vpush %v603_v17 }
  0x20   :  { %57 = vadd.xlane.f32.xlu0 %v56_v23 }
  0x50   :  { %s579_s21 = spop %578 }
  0x51   :  { %v61_v30 = vstv %s579_s21 }
  0xa9   :  { %v71_v26 = vpop.xlane.xlu0 %70 }
  0xaa   :  { %v72_v27 = vadd.f32 1e-24, %v71_v26 }
  0xac   :  { %604 = vrsqrt.f32 %v72_v27 }
  0xad   :  { %v58_v28 = vpop.xlane.xlu0 %57 }
  0xae   :  { %v59_v29 = vadd.f32 1e-24, %v58_v28 }
  0xb0   :  { %606 = vrsqrt.f32 %v59_v29 }
  0xb6   :  { %v605_v31 = vpop.eup %604 }
  0xb7   :  { %v74_v32 = vmul.f32 %v605_v31, %v61_v30 }
  0xb9   :  { %v80_v33 = vmul.f32 %v74_v32, %v47_v2  ;;  %v82_v34 = vmul.f32 %v74_v32, %v49_v4  ;;  %v79_v35 = vmul.f32 %v74_v32, %v46_v1  ;;  %v81_v36 = vmul.f32 %v74_v32, %v48_v3 }
  0xba   :  { %v607_v37 = vpop.eup %606 }
  0xbb   :  { %v62_v38 = vmul.f32 %v607_v37, %v61_v30  ;;  %v111_v39 = vpack.c.bf16 %v80_v33, %v80_v33  ;;  %v113_v40 = vpack.c.bf16 %v82_v34, %v82_v34  ;;  %v110_v41 = vpack.c.bf16 %v79_v35, %v79_v35 }
  0xbc   :  { %v112_v42 = vpack.c.bf16 %v81_v36, %v81_v36 }
  0xbd   :  { %114 = vmatprep.subr.bf16.mxu1 %v111_v39  ;;  %154 = vmatprep.subr.bf16.mxu0 %v113_v40  ;;  %v76_v43 = vmul.f32 %v62_v38, %v43_v9  ;;  %v78_v44 = vmul.f32 %v62_v38, %v45_v11  ;;  %v75_v45 = vmul.f32 %v62_v38, %v42_v8  ;;  %v567_v8 = vld [vmem:[%s829_s2] ss:$0 sm:$0xff]  ;;  %v362_v9 = vpop.permute.xlu1 %361  ;;  %s683_s2 = smov 0.0  }
  0xbe   :  { %115 = vmatpush1.bf16.xpose.msra.mxu1 %v110_v41  ;;  %155 = vmatpush1.bf16.xpose.msra.mxu0 %v112_v42  ;;  %v77_v46 = vmul.f32 %v62_v38, %v44_v10  ;;  %vm367_vm1 = vcmp.eq.s32.totalorder %v362_v9, %v567_v8  ;;  %534 = sst [smem:[#allocation7 + $0x5]] %s683_s2 }
  0xbf   :  { %194 = vmatprep.subr.bf16.mxu1 %v111_v39  ;;  %v107_v47 = vpack.c.bf16 %v76_v43, %v76_v43  ;;  %v109_v48 = vpack.c.bf16 %v78_v44, %v78_v44  ;;  %v83_v49 = vmul.f32 %v79_v35, %v75_v45  ;;  %v84_v50 = vmul.f32 %v80_v33, %v76_v43  ;;  %536 = sst [smem:[#allocation7 + $0x6]] %s683_s2 }
  0xc0   :  { %v85_v51 = vmul.f32 %v81_v36, %v77_v46  ;;  %v86_v52 = vmul.f32 %v82_v34, %v78_v44  ;;  %v106_v54 = vpack.c.bf16 %v75_v45, %v75_v45  ;;  %v108_v55 = vpack.c.bf16 %v77_v46, %v77_v46  ;;  %538 = sst [smem:[#allocation7 + $0x7]] %s683_s2 }
  0xc1   :  { %146 = vmatprep.mubr.bf16.mxu1 %v107_v47  ;;  %186 = vmatprep.mubr.bf16.mxu0 %v109_v48  ;;  %v87_v53 = vadd.f32 %v84_v50, %v83_v49 }
  0xc2   :  { %274 = vmatprep.subr.bf16.mxu0 %v107_v47 }
  0xc3   :  { %v88_v56 = vadd.f32 %v87_v53, %v85_v51 }
  0xc5   :  { %147 = vmatmul.mubr.bf16.vlgmr.msra.gmra.mrb[0].mxu1 %v106_v54  ;;  %187 = vmatmul.mubr.bf16.vlgmr.msra.gmra.mrb[0].mxu0 %v108_v55  ;;  %v755_v57 = vadd.f32 %v88_v56, %v86_v52 }
  0xc6   :  { %195 = vmatpush1.bf16.xpose.msra.mxu1 %v110_v41  ;;  %226 = vmatprep.mubr.bf16.mxu1 %v111_v39 }
  0xc7   :  { %275 = vmatpush1.bf16.xpose.msra.mxu0 %v106_v54  ;;  %306 = vmatprep.mubr.bf16.mxu0 %v107_v47 }
  0xc8   :  { %234 = vmatprep.subr.bf16.mxu1 %v113_v40  ;;  %314 = vmatprep.subr.bf16.mxu0 %v109_v48 }
  0xcd   :  { %227 = vmatmul.mubr.bf16.vlgmr.msra.gmra.mrb[4].mxu1 %v110_v41 }
  0xce   :  { %307 = vmatmul.mubr.bf16.vlgmr.msra.gmra.mrb[4].mxu0 %v106_v54  ;;  %235 = vmatpush1.bf16.xpose.msra.mxu1 %v112_v42 }
  0xcf   :  { %266 = vmatprep.mubr.bf16.mxu1 %v113_v40  ;;  %315 = vmatpush1.bf16.xpose.msra.mxu0 %v108_v55 }
  0xd0   :  { %346 = vmatprep.mubr.bf16.mxu0 %v109_v48 }
  0xd9   :  { %267 = vmatmul.mubr.bf16.vlgmr.msra.gmra.mrb[4].mxu1 %v112_v42 }
  0xda   :  { %347 = vmatmul.mubr.bf16.vlgmr.msra.gmra.mrb[4].mxu0 %v108_v55 }
 0x198   :  { %v148_v58 = vpop.f32.mrb[0].mxu1  ;;  %v188_v59 = vpop.f32.mrb[0].mxu0 }
 0x199   :  { %v757_v60 = vadd.f32 %v188_v59, %v148_v58  ;;  %v150_v61 = vpop.f32.mrb[1].mxu1  ;;  %v190_v62 = vpop.f32.mrb[1].mxu0 }
 0x19a   :  { %v151_v63 = vpop.f32.mrb[2].mxu1  ;;  %v191_v1 = vpop.f32.mrb[2].mxu0 }
 0x19b   :  { %v152_v2 = vpop.f32.mrb[3].mxu1  ;;  %v192_v3 = vpop.f32.mrb[3].mxu0  ;;  %v370_v4 = vsel %vm356_vm0, %v757_v60, -inf  ;;  %v355_v5 = vmul.f32 %v757_v60, %v39_v0  ;;  %v492_v6 = vsel %vm356_vm0, %v757_v60, inf }
 0x19c   :  { %371 = vmax.xlane.f32.xlu1 %v370_v4  ;;  %v407_v7 = vrot.slane %v370_v4, 4  ;;  %v463_v3 = vlaneseq }
 0x19d   :  { %357 = vst.msk [vmem:[#allocation8] sm:$0xff] %vm356_vm0, %v355_v5 }
 0x19e   :  { %v408_v10 = vmax.f32 %v370_v4, %v407_v7  ;;  %v464_v7 = vand.u32 127, %v463_v3 }
 0x1a0   :  { %493 = vmin.xlane.f32.xlu1 %v492_v6  ;;  %v409_v0 = vrot.slane %v408_v10, 2  ;;  %v465_v9 = vcvt.s32.f32 %v464_v7 }
 0x1a2   :  { %v410_v24 = vmax.f32 %v408_v10, %v409_v0  ;;  %v472_v0 = vshrl.u32 %v463_v3, 7 }
 0x1a4   :  { %v411_v27 = vrot.slane %v410_v24, 1 }
 0x1a6   :  { %v412_v30 = vmax.f32 %v410_v24, %v411_v27 }
 0x1ac   :  { %v268_v11 = vpop.f32.mrb[4].mxu1 }
 0x1ad   :  { %v368_v12 = vsel %vm367_vm1, -1e+09, %v268_v11  ;;  %v348_v13 = vpop.f32.mrb[4].mxu0  ;;  %v270_v14 = vpop.f32.mrb[5].mxu1 }
 0x1ae   :  { %v369_v15 = vsel %vm367_vm1, -1e+09, %v348_v13  ;;  %v350_v16 = vpop.f32.mrb[5].mxu0  ;;  %v271_v17 = vpop.f32.mrb[6].mxu1  ;;  %v373_v18 = vsel %vm356_vm0, %v368_v12, -inf }
 0x1af   :  { %v413_v19 = vsel %vm356_vm0, %v369_v15, -inf  ;;  %v351_v20 = vpop.f32.mrb[6].mxu0  ;;  %374 = vmax.xlane.f32.xlu0 %v373_v18  ;;  %v272_v21 = vpop.f32.mrb[7].mxu1  ;;  %v473_v17 = vcvt.s32.f32 %v472_v0 }
 0x1b0   :  { %v414_v22 = vrot.slane %v413_v19, 4  ;;  %v352_v23 = vpop.f32.mrb[7].mxu0 }
 0x1b2   :  { %v415_v25 = vmax.f32 %v413_v19, %v414_v22 }
 0x1b4   :  { %v416_v26 = vrot.slane %v415_v25, 2 }
 0x1b6   :  { %v417_v28 = vmax.f32 %v415_v25, %v416_v26  ;;  %v505_v26 = vsel %vm356_vm0, %v757_v60, 0.0 }
 0x1b8   :  { %v418_v29 = vrot.slane %v417_v28, 1 }
 0x1ba   :  { %v419_v31 = vmax.f32 %v417_v28, %v418_v29 }
 0x1bc   :  { %v420_v32 = vmax.f32 %v412_v30, %v419_v31 }
 0x1be   :  { %v421_v33 = vsub.f32 %v757_v60, %v420_v32  ;;  %v431_v34 = vsub.f32 %v369_v15, %v420_v32 }
 0x1c0   :  { %v422_v35 = vmul.f32 1.442695, %v421_v33  ;;  %v432_v36 = vmul.f32 1.442695, %v431_v34 }
 0x1c2   :  { %608 = vpow2.f32 %v422_v35 }
 0x1c3   :  { %610 = vpow2.f32 %v432_v36 }
 0x1cc   :  { %v609_v37 = vpop.eup %608 }
 0x1cd   :  { %v611_v38 = vpop.eup %610  ;;  %v424_v39 = vsel %vm356_vm0, %v609_v37, 0.0 }
 0x1ce   :  { %v434_v40 = vsel %vm356_vm0, %v611_v38, 0.0  ;;  %v425_v41 = vrot.slane %v424_v39, 4 }
 0x1cf   :  { %v435_v42 = vrot.slane %v434_v40, 4 }
 0x1d0   :  { %v426_v43 = vadd.f32 %v425_v41, %v424_v39 }
 0x1d1   :  { %v436_v44 = vadd.f32 %v435_v42, %v434_v40 }
 0x1d2   :  { %v427_v45 = vrot.slane %v426_v43, 2 }
 0x1d3   :  { %v437_v46 = vrot.slane %v436_v44, 2 }
 0x1d4   :  { %v428_v47 = vadd.f32 %v427_v45, %v426_v43 }
 0x1d5   :  { %v438_v48 = vadd.f32 %v437_v46, %v436_v44 }
 0x1d6   :  { %v429_v49 = vrot.slane %v428_v47, 1 }
 0x1d7   :  { %v439_v50 = vrot.slane %v438_v48, 1 }
 0x1d8   :  { %v430_v51 = vadd.f32 %v429_v49, %v428_v47 }
 0x1d9   :  { %v440_v52 = vadd.f32 %v439_v50, %v438_v48 }
 0x1db   :  { %v441_v53 = vadd.f32 %v440_v52, %v430_v51 }
 0x1dd   :  { %612 = vlog2.f32 %v441_v53 }
 0x1e7   :  { %v613_v54 = vpop.eup %612 }
 0x1e8   :  { %v443_v55 = vmul.f32 0.6931472, %v613_v54 }
 0x1ea   :  { %v444_v56 = vadd.f32 %v443_v55, %v420_v32 }
 0x1ec   :  { %v446_v19 = vsel %vm445_vm4, %v444_v56, 0.0 }
 0x229   :  { %v777_v58 = vpop.xlane.xlu1 %371 }
 0x22a   :  { %vm466_vm2 = vcmp.eq.f32.partialorder %v757_v60, %v777_v58 }
 0x22b   :  { %v467_v10 = vsel %vm466_vm2, %v465_v9, 8.0 }
 0x22c   :  { %v468_v11 = vsel %vm356_vm0, %v467_v10, inf }
 0x23c   :  { %v375_v59 = vpop.xlane.xlu0 %374 }
 0x23d   :  { %v376_v61 = vmax.f32 %v777_v58, %v375_v59 }
 0x23f   :  { %v377_v62 = vsub.f32 %v757_v60, %v376_v61  ;;  %v383_v63 = vsub.f32 %v368_v12, %v376_v61 }
 0x241   :  { %v378_v1 = vmul.f32 1.442695, %v377_v62  ;;  %v384_v2 = vmul.f32 1.442695, %v383_v63 }
 0x243   :  { %614 = vpow2.f32 %v378_v1 }
 0x244   :  { %616 = vpow2.f32 %v384_v2 }
 0x24d   :  { %v615_v4 = vpop.eup %614 }
 0x24e   :  { %v380_v5 = vsel %vm356_vm0, %v615_v4, 0.0  ;;  %v617_v6 = vpop.eup %616 }
 0x24f   :  { %381 = vadd.xlane.f32.xlu0 %v380_v5  ;;  %v386_v8 = vsel %vm356_vm0, %v617_v6, 0.0 }
 0x253   :  { %387 = vadd.xlane.f32.xlu0 %v386_v8 }
 0x257   :  { %90 = vadd.xlane.f32.xlu0 %v755_v57  ;;  %v682_v57 = vmov 0.0  }
 0x25b   :  { %469 = vmin.xlane.f32.xlu0 %v468_v11 }
 0x2dc   :  { %v382_v12 = vpop.xlane.xlu0 %381 }
 0x2e0   :  { %v388_v13 = vpop.xlane.xlu0 %387 }
 0x2e1   :  { %v389_v14 = vadd.f32 %v388_v13, %v382_v12 }
 0x2e3   :  { %618 = vlog2.f32 %v389_v14 }
 0x2e4   :  { %v91_v15 = vpop.xlane.xlu0 %90 }
 0x2e5   :  { %v93_v16 = vsel %vm92_vm3, %v91_v15, 0.0 }
 0x2e6   :  { %94 = vadd.xlane.f32.xlu0 %v93_v16 }
 0x2e8   :  { %v470_v18 = vpop.xlane.xlu0 %469 }
 0x2e9   :  { %vm474_vm5 = vcmp.eq.f32.partialorder %v470_v18, %v473_v17 }
 0x2ea   :  { %447 = vadd.xlane.f32.xlu0 %v446_v19  ;;  %v568_v20 = vsel %vm474_vm5, 1.0, %v682_v57 }
 0x2eb   :  { %v477_v22 = vsel %vm92_vm3, %v568_v20, 0.0 }
 0x2ed   :  { %v619_v21 = vpop.eup %618 }
 0x2ee   :  { %v391_v23 = vmul.f32 0.6931472, %v619_v21  ;;  %478 = vadd.xlane.f32.xlu0 %v477_v22 }
 0x2f0   :  { %v392_v24 = vadd.f32 %v391_v23, %v376_v61 }
 0x2f2   :  { %v393_v25 = vsel %vm92_vm3, %v392_v24, 0.0 }
 0x2f3   :  { %394 = vadd.xlane.f32.xlu0 %v393_v25 }
 0x2f7   :  { %506 = vadd.xlane.f32.xlu0 %v505_v26 }
 0x2f8   :  { %653 = shalt.err (!%p650_p12)
}
 0x2f9   :  { %s654_s30 = scalar_lea.hbm %s833_s6, 128 }
 0x2fa   :  { %p655_p13 = scmp.ne.s32.totalorder %s833_s6, %s654_s30  ;;  %p658_p0 = scmp.lt.u32.totalorder %s654_s30, %s833_s6 }
 0x2fc   :  { %p660_p1 = pnand %p658_p0, %p655_p13 }
 0x2fe   :  { %663 = shalt.err (!%p660_p1)
}
 0x2ff   :  { %556 = dma.vmem_to_hbm [thread:$0]  %s554_s26, 128, %s833_s6, [#allocation5]   ;;  %v494_v29 = vpop.xlane.xlu1 %493  ;;  %v521_v36 = vrot.slane %v777_v58, 4 }
 0x300   :  { %v495_v33 = vrot.slane %v494_v29, 4  ;;  %s664_s12 = scalar_lea.hbm %s832_s5, 16 }
 0x301   :  { %v522_v45 = vmax.f32 %v777_v58, %v521_v36  ;;  %p665_p2 = scmp.ne.s32.totalorder %s832_s5, %s664_s12  ;;  %p668_p3 = scmp.lt.u32.totalorder %s664_s12, %s832_s5 }
 0x302   :  { %v496_v40 = vmin.f32 %v494_v29, %v495_v33 }
 0x303   :  { %v523_v52 = vrot.slane %v522_v45, 2  ;;  %p670_p4 = pnand %p668_p3, %p665_p2 }
 0x304   :  { %v497_v48 = vrot.slane %v496_v40, 2 }
 0x305   :  { %v524_v63 = vmax.f32 %v522_v45, %v523_v52 }
 0x306   :  { %v498_v56 = vmin.f32 %v496_v40, %v497_v48 }
 0x307   :  { %v525_v7 = vrot.slane %v524_v63, 1 }
 0x308   :  { %v499_v4 = vrot.slane %v498_v56, 1 }
 0x309   :  { %v526_v12 = vmax.f32 %v524_v63, %v525_v7 }
 0x30a   :  { %v500_v10 = vmin.f32 %v498_v56, %v499_v4 }
 0x373   :  { %v95_v60 = vpop.xlane.xlu0 %94 }
 0x374   :  { %v96_v27 = vrot.slane %v95_v60, 4 }
 0x376   :  { %v97_v28 = vadd.f32 %v96_v27, %v95_v60 }
 0x377   :  { %v448_v30 = vpop.xlane.xlu0 %447 }
 0x378   :  { %v98_v31 = vrot.slane %v97_v28, 2  ;;  %v449_v32 = vrot.slane %v448_v30, 4 }
 0x37a   :  { %v99_v34 = vadd.f32 %v98_v31, %v97_v28  ;;  %v450_v37 = vadd.f32 %v449_v32, %v448_v30 }
 0x37b   :  { %v479_v35 = vpop.xlane.xlu0 %478 }
 0x37c   :  { %v480_v38 = vrot.slane %v479_v35, 4  ;;  %v100_v39 = vrot.slane %v99_v34, 1  ;;  %v451_v43 = vrot.slane %v450_v37, 2 }
 0x37e   :  { %v481_v41 = vadd.f32 %v480_v38, %v479_v35  ;;  %v101_v42 = vadd.f32 %v100_v39, %v99_v34  ;;  %v452_v51 = vadd.f32 %v451_v43, %v450_v37 }
 0x380   :  { %580 = vpush %v101_v42  ;;  %v395_v44 = vpop.xlane.xlu0 %394  ;;  %v482_v46 = vrot.slane %v481_v41, 2  ;;  %v453_v62 = vrot.slane %v452_v51, 1 }
 0x381   :  { %v396_v47 = vrot.slane %v395_v44, 4 }
 0x382   :  { %v483_v55 = vadd.f32 %v482_v46, %v481_v41  ;;  %v454_v6 = vadd.f32 %v453_v62, %v452_v51 }
 0x383   :  { %v397_v49 = vadd.f32 %v396_v47, %v395_v44 }
 0x384   :  { %v507_v50 = vpop.xlane.xlu0 %506  ;;  %v484_v3 = vrot.slane %v483_v55, 1 }
 0x385   :  { %v398_v53 = vrot.slane %v397_v49, 2  ;;  %v508_v54 = vrot.slane %v507_v50, 4 }
 0x386   :  { %v485_v8 = vadd.f32 %v484_v3, %v483_v55 }
 0x387   :  { %v509_v59 = vadd.f32 %v508_v54, %v507_v50  ;;  %v399_v61 = vadd.f32 %v398_v53, %v397_v49 }
 0x389   :  { %v510_v1 = vrot.slane %v509_v59, 2  ;;  %v400_v2 = vrot.slane %v399_v61, 1 }
 0x38b   :  { %v511_v58 = vadd.f32 %v510_v1, %v509_v59  ;;  %v401_v5 = vadd.f32 %v400_v2, %v399_v61 }
 0x38d   :  { %582 = vpush %v401_v5  ;;  %v512_v9 = vrot.slane %v511_v58, 1 }
 0x38e   :  { %584 = vpush %v454_v6 }
 0x38f   :  { %586 = vpush %v485_v8  ;;  %v513_v11 = vadd.f32 %v512_v9, %v511_v58 }
 0x390   :  { %588 = vpush %v500_v10 }
 0x391   :  { %590 = vpush %v513_v11 }
 0x392   :  { %592 = vpush %v526_v12 }
 0x3b1   :  { %s581_s6 = spop %580 }
 0x3b2   :  { %s105_s13 = smul.f32 0.125, %s581_s6 }
 0x3be   :  { %s583_s14 = spop %582 }
 0x3bf   :  { %s405_s15 = smul.f32 0.125, %s583_s14  ;;  %s585_s16 = spop %584 }
 0x3c0   :  { %s458_s3 = smul.f32 0.125, %s585_s16  ;;  %s587_s17 = spop %586 }
 0x3c1   :  { %s406_s18 = ssub.f32 %s405_s15, %s105_s13  ;;  %s489_s19 = smul.f32 0.125, %s587_s17 }
 0x3c2   :  { %s459_s4 = ssub.f32 %s458_s3, %s105_s13  ;;  %s589_s20 = spop %588 }
 0x3c3   :  { %s460_s21 = smul.f32 0.5, %s406_s18  ;;  %532 = sst [smem:[#allocation7 + $0x4]] %s489_s19 }
 0x3c4   :  { %s461_s1 = smul.f32 0.5, %s459_s4  ;;  %s591_s22 = spop %590 }
 0x3c5   :  { %s502_s2 = smul.f32 %s589_s20, %s827_s0  ;;  %s593_s25 = spop %592 }
 0x3c6   :  { %s462_s26 = sadd.f32 %s461_s1, %s460_s21  ;;  %s517_s27 = smul.f32 0.015625, %s591_s22 }
 0x3c7   :  { %504 = sst [smem:[#allocation7 + $0x1]] %s502_s2  ;;  %s528_s30 = smul.f32 %s593_s25, %s827_s0 }
 0x3c8   :  { %491 = sst [smem:[#allocation7]] %s462_s26  ;;  %s518_s9 = smul.f32 %s517_s27, %s827_s0 }
 0x3c9   :  { %530 = sst [smem:[#allocation7 + $0x3]] %s528_s30 }
 0x3ca   :  { %520 = sst [smem:[#allocation7 + $0x2]] %s518_s9 }
 0x3cb   :  { %673 = shalt.err (!%p670_p4)
}
 0x3cc   :  { %s685_s16 = smov [#allocation7]  }
 0x3cd   :  { %546 = dma.smem_to_hbm %s685_s16, 16, %s832_s5, [#allocation6]  }
 0x3ce   :  { %676 = dma.done.wait [#allocation6], 16  }
 0x3cf   :  { %677 = vsyncadd [#allocation6], 4294967280 }
 0x3d0   :  { %678 = dma.done.wait [#allocation5], 128  }
 0x3d1   :  { %679 = vsyncadd [#allocation5], 4294967168 }
 0x3d2   :  { %563 = sfence }
 0x3d3   :  { %564 = vsyncpa [#allocation4], 1 }
 0x3d4   :  { %565 = vsyncpa [#allocation5], 1 }
 0x3d5   :  { %566 = vsyncpa [#allocation6], 1 }

</bundles_post_ra>
